<compile_context>
chip_gen: v6e
topology: v6e:2x2x1
jax: 0.10.0
libtpu: 0.0.40
codegen_flags: <defaults>
</compile_context>

<pallas_src>
import functools

import jax
import jax.numpy as jnp
from jax.experimental import pallas as pl
from jax.experimental.pallas import tpu as pltpu


def custom_loss_kernel(yp_ref, tgt_ref, pi_ref, r_ref, out_ref, acc_ref, *,
                       penalty, num_classes, inv_n):
    """One N-tile of the loss.

    Layouts (N is the 128-wide lane axis everywhere):
      yp_ref : (C, tile_n)     -- y_predicted^T
      tgt_ref: (1, tile_n)     int32
      pi_ref : (A, T, tile_n)  -- per-agent action probabilities
      r_ref  : (A, 1, tile_n)  -- per-agent rewards
      out_ref: (1, 1) f32 SMEM -- scalar loss (running value; final step is exact)
      acc_ref: (1, 1) f32 SMEM -- accumulator scratch, persists across grid steps
    """
    step = pl.program_id(0)

    @pl.when(step == 0)
    def _():
        acc_ref[0, 0] = jnp.float32(0.0)

    # argmax over classes (first-max index, matching torch.argmax); classes on sublanes.
    yp = yp_ref[...].astype(jnp.float32)                        # (C, tile_n)
    mx = jnp.max(yp, axis=0, keepdims=True)                     # (1, tile_n)
    cls = jax.lax.broadcasted_iota(jnp.int32, yp.shape, 0)      # (C, tile_n)
    pred = jnp.min(jnp.where(yp == mx, cls, num_classes),
                   axis=0, keepdims=True)                       # (1, tile_n) int32

    t = jnp.where(pred == tgt_ref[...], jnp.float32(1.0),
                  jnp.float32(penalty))                         # (1, tile_n)

    # EUP log + cheap sublane (T-axis) reduction; N stays lane-dense throughout.
    pi = pi_ref[...].astype(jnp.float32)                        # (A, T, tile_n)
    logsum = jnp.sum(jnp.log(pi), axis=1)                       # (A, tile_n)
    rt = r_ref[...].astype(jnp.float32)[:, 0, :] * t            # (A, tile_n)

    acc_ref[0, 0] += jnp.sum(logsum * rt)
    # Running result; value after the last grid step is the final loss.
    out_ref[0, 0] = acc_ref[0, 0] * jnp.float32(inv_n)


def custom_loss(y_predicted, target, pi_stack, r_stack, penalty, tile_n=None):
    """y_predicted: (N, C), target: (N,), pi_stack: (A, N, T), r_stack: (A, N)."""
    N, C = y_predicted.shape
    A, _, T = pi_stack.shape

    LANE = 128
    if tile_n is None:
        # Keep the double-buffered pi tile well inside scoped VMEM on every generation.
        budget_bytes = 8 * 1024 * 1024
        max_tile = max(LANE, (budget_bytes // (A * T * 4 * 2)) // LANE * LANE)
        tile_n = min(max_tile, 2048, -(-N // LANE) * LANE)
    padded_n = -(-N // tile_n) * tile_n
    pad = padded_n - N
    grid_n = padded_n // tile_n

    # Lane-major layouts (sample axis N last). Native dtypes; up-cast happens in-kernel.
    yp_t = jnp.transpose(y_predicted, (1, 0))                   # (C, N)
    pi_t = jnp.transpose(pi_stack, (0, 2, 1))                   # (A, T, N)
    tgt = target.reshape(1, N).astype(jnp.int32)                # (1, N)
    r = r_stack.reshape(A, 1, N)                                # (A, 1, N)

    if pad:
        # Padded samples: Pi=1 (log -> 0) and R=0 so they contribute exactly zero.
        yp_t = jnp.pad(yp_t, ((0, 0), (0, pad)))
        pi_t = jnp.pad(pi_t, ((0, 0), (0, 0), (0, pad)), constant_values=1.0)
        tgt = jnp.pad(tgt, ((0, 0), (0, pad)))
        r = jnp.pad(r, ((0, 0), (0, 0), (0, pad)))

    kernel = functools.partial(custom_loss_kernel, penalty=float(penalty),
                               num_classes=C, inv_n=1.0 / N)

    bytes_in = int(yp_t.size * yp_t.dtype.itemsize + tgt.size * tgt.dtype.itemsize
                   + pi_t.size * pi_t.dtype.itemsize + r.size * r.dtype.itemsize)

    out = pl.pallas_call(
        kernel,
        out_shape=jax.ShapeDtypeStruct((1, 1), jnp.float32),
        grid_spec=pltpu.PrefetchScalarGridSpec(
            num_scalar_prefetch=0,
            grid=(grid_n,),
            in_specs=[
                pl.BlockSpec((C, tile_n), lambda i: (0, i)),
                pl.BlockSpec((1, tile_n), lambda i: (0, i)),
                pl.BlockSpec((A, T, tile_n), lambda i: (0, 0, i)),
                pl.BlockSpec((A, 1, tile_n), lambda i: (0, 0, i)),
            ],
            out_specs=pl.BlockSpec(memory_space=pltpu.MemorySpace.SMEM),
            scratch_shapes=[pltpu.SMEM((1, 1), jnp.float32)],
        ),
        compiler_params=pltpu.CompilerParams(
            dimension_semantics=("arbitrary",)),  # accumulation across N tiles
        cost_estimate=pl.CostEstimate(
            flops=3 * A * padded_n * T,
            transcendentals=A * padded_n * T,
            bytes_accessed=bytes_in + 4),
    )(yp_t, tgt, pi_t, r)
    return out[0, 0]


def reference_loss(y_predicted, target, pi_stack, r_stack, penalty):
    """Pure-JAX reference matching the PyTorch forward."""
    pred = jnp.argmax(y_predicted, axis=1)
    t = jnp.where(pred == target, 1.0, penalty)
    loss = 0.0
    for a in range(pi_stack.shape[0]):
        R = r_stack[a] * t
        loss = loss + jnp.mean(jnp.sum(jnp.log(pi_stack[a]), axis=1) * R)
    return loss


if __name__ == "__main__":
    # Small deterministic example; tile_n=128 exercises multi-step accumulation + padding.
    N, C = 300, 4      # samples, classes (y_predicted is (N, C))
    A, T = 3, 16       # number of agents, per-agent action steps (a.Pi is (N, T))
    penalty = 0.5

    key = jax.random.PRNGKey(0)
    k1, k2, k3, k4 = jax.random.split(key, 4)

    y_predicted = jax.random.normal(k1, (N, C), dtype=jnp.float32)
    target = jax.random.randint(k2, (N,), 0, C, dtype=jnp.int32)
    # Pi must be strictly positive (log is taken): use softmax of random logits.
    pi_stack = jax.nn.softmax(jax.random.normal(k3, (A, N, T), dtype=jnp.float32), axis=-1)
    r_stack = jax.random.normal(k4, (A, N), dtype=jnp.float32)

    out = custom_loss(y_predicted, target, pi_stack, r_stack, penalty, tile_n=128)
    out = jax.block_until_ready(out)

    ref = reference_loss(y_predicted, target, pi_stack, r_stack, penalty)
    assert jnp.allclose(out, ref, rtol=1e-4, atol=1e-4), (out, ref)

    print("KERNEL_OK")
</pallas_src>

<mosaic_0001>
module attributes {stable_mosaic.version = 11 : i64} {
  func.func @custom_loss_kernel(%arg0: i32, %arg1: memref<4x128xf32, #tpu.memory_space<vmem>>, %arg2: memref<1x128xi32, #tpu.memory_space<vmem>>, %arg3: memref<3x16x128xf32, #tpu.memory_space<vmem>>, %arg4: memref<3x1x128xf32, #tpu.memory_space<vmem>>, %arg5: memref<1x1xf32, #tpu.memory_space<smem>>, %arg6: memref<1x1xf32, #tpu.memory_space<smem>>) attributes {dimension_semantics = [#tpu.dimension_semantics<arbitrary>], iteration_bounds = array<i64: 3>, scalar_prefetch = 0 : i64, scratch_operands = 1 : i64, tpu.core_type = #tpu.core_type<tc>, window_params = [{transform_indices = @transform_0, window_bounds = array<i64: 4, 128>}, {transform_indices = @transform_1, window_bounds = array<i64: 1, 128>}, {transform_indices = @transform_2, window_bounds = array<i64: 3, 16, 128>}, {transform_indices = @transform_3, window_bounds = array<i64: 3, 1, 128>}, {transform_indices = @transform_4, window_bounds = array<i64: 1, 1>}]} {
    %c0_i32 = arith.constant 0 : i32
    %0 = arith.cmpi eq, %arg0, %c0_i32 : i32
    %1 = arith.extui %0 : i1 to i32
    %c0_i32_0 = arith.constant 0 : i32
    %2 = arith.cmpi ne, %1, %c0_i32_0 : i32
    scf.if %2 {
      %cst_24 = arith.constant 0.000000e+00 : f32
      %c0_25 = arith.constant 0 : index
      %c0_26 = arith.constant 0 : index
      %36 = memref.load %arg6[%c0_25, %c0_26] : memref<1x1xf32, #tpu.memory_space<smem>>
      memref.store %cst_24, %arg6[%c0_25, %c0_26] : memref<1x1xf32, #tpu.memory_space<smem>>
    } else {
    }
    %c0 = arith.constant 0 : index
    %c0_1 = arith.constant 0 : index
    %3 = vector.load %arg1[%c0, %c0_1] : memref<4x128xf32, #tpu.memory_space<vmem>>, vector<4x128xf32>
    %cst = arith.constant dense<0xFF800000> : vector<128xf32>
    %4 = vector.multi_reduction <maximumf>, %3, %cst [0] : vector<4x128xf32> to vector<128xf32>
    %5 = vector.shape_cast %4 : vector<128xf32> to vector<1x128xf32>
    %6 = tpu.iota {dimensions = array<i32: 0>} : vector<4x128xi32>
    %7 = vector.broadcast %5 : vector<1x128xf32> to vector<4x128xf32>
    %8 = arith.cmpf oeq, %3, %7 : vector<4x128xf32>
    %c4_i32 = arith.constant 4 : i32
    %9 = vector.broadcast %c4_i32 : i32 to vector<4x128xi32>
    %10 = arith.select %8, %6, %9 : vector<4x128xi1>, vector<4x128xi32>
    %cst_2 = arith.constant dense<2147483647> : vector<128xi32>
    %11 = vector.multi_reduction <minsi>, %10, %cst_2 [0] : vector<4x128xi32> to vector<128xi32>
    %12 = vector.shape_cast %11 : vector<128xi32> to vector<1x128xi32>
    %c0_3 = arith.constant 0 : index
    %c0_4 = arith.constant 0 : index
    %13 = vector.load %arg2[%c0_3, %c0_4] : memref<1x128xi32, #tpu.memory_space<vmem>>, vector<1x128xi32>
    %14 = arith.cmpi eq, %12, %13 : vector<1x128xi32>
    %cst_5 = arith.constant 1.000000e+00 : f32
    %cst_6 = arith.constant 5.000000e-01 : f32
    %15 = vector.broadcast %cst_5 : f32 to vector<1x128xf32>
    %16 = vector.broadcast %cst_6 : f32 to vector<1x128xf32>
    %17 = arith.select %14, %15, %16 : vector<1x128xi1>, vector<1x128xf32>
    %c0_7 = arith.constant 0 : index
    %c0_8 = arith.constant 0 : index
    %c0_9 = arith.constant 0 : index
    %18 = vector.load %arg3[%c0_7, %c0_8, %c0_9] : memref<3x16x128xf32, #tpu.memory_space<vmem>>, vector<3x16x128xf32>
    %19 = math.log %18 : vector<3x16x128xf32>
    %cst_10 = arith.constant dense<0.000000e+00> : vector<3x128xf32>
    %20 = vector.multi_reduction <add>, %19, %cst_10 [1] : vector<3x16x128xf32> to vector<3x128xf32>
    %c0_11 = arith.constant 0 : index
    %c0_12 = arith.constant 0 : index
    %c0_13 = arith.constant 0 : index
    %21 = vector.load %arg4[%c0_11, %c0_12, %c0_13] : memref<3x1x128xf32, #tpu.memory_space<vmem>>, vector<3x1x128xf32>
    %22 = vector.shape_cast %21 : vector<3x1x128xf32> to vector<3x128xf32>
    %23 = vector.broadcast %17 : vector<1x128xf32> to vector<3x128xf32>
    %24 = arith.mulf %22, %23 : vector<3x128xf32>
    %c0_14 = arith.constant 0 : index
    %c0_15 = arith.constant 0 : index
    %25 = memref.load %arg6[%c0_14, %c0_15] : memref<1x1xf32, #tpu.memory_space<smem>>
    %26 = arith.mulf %20, %24 : vector<3x128xf32>
    %27 = vector.shape_cast %26 : vector<3x128xf32> to vector<1x3x128xf32>
    %cst_16 = arith.constant dense<0.000000e+00> : vector<1xf32>
    %28 = vector.multi_reduction <add>, %27, %cst_16 [1, 2] : vector<1x3x128xf32> to vector<1xf32>
    %29 = vector.shape_cast %28 : vector<1xf32> to vector<1x1x1xf32>
    %30 = vector.extract %29[0, 0, 0] : f32 from vector<1x1x1xf32>
    %31 = arith.addf %25, %30 : f32
    %c0_17 = arith.constant 0 : index
    %c0_18 = arith.constant 0 : index
    %32 = memref.load %arg6[%c0_17, %c0_18] : memref<1x1xf32, #tpu.memory_space<smem>>
    memref.store %31, %arg6[%c0_17, %c0_18] : memref<1x1xf32, #tpu.memory_space<smem>>
    %c0_19 = arith.constant 0 : index
    %c0_20 = arith.constant 0 : index
    %33 = memref.load %arg6[%c0_19, %c0_20] : memref<1x1xf32, #tpu.memory_space<smem>>
    %cst_21 = arith.constant 0.00333333341 : f32
    %34 = arith.mulf %33, %cst_21 : f32
    %c0_22 = arith.constant 0 : index
    %c0_23 = arith.constant 0 : index
    %35 = memref.load %arg5[%c0_22, %c0_23] : memref<1x1xf32, #tpu.memory_space<smem>>
    memref.store %34, %arg5[%c0_22, %c0_23] : memref<1x1xf32, #tpu.memory_space<smem>>
    return
  }
  func.func @transform_0(%arg0: i32) -> (i32, i32) {
    %c0_i32 = arith.constant 0 : i32
    %c0_i32_0 = arith.constant 0 : i32
    return %c0_i32, %arg0 : i32, i32
  }
  func.func @transform_1(%arg0: i32) -> (i32, i32) {
    %c0_i32 = arith.constant 0 : i32
    %c0_i32_0 = arith.constant 0 : i32
    return %c0_i32, %arg0 : i32, i32
  }
  func.func @transform_2(%arg0: i32) -> (i32, i32, i32) {
    %c0_i32 = arith.constant 0 : i32
    %c0_i32_0 = arith.constant 0 : i32
    %c0_i32_1 = arith.constant 0 : i32
    return %c0_i32, %c0_i32_0, %arg0 : i32, i32, i32
  }
  func.func @transform_3(%arg0: i32) -> (i32, i32, i32) {
    %c0_i32 = arith.constant 0 : i32
    %c0_i32_0 = arith.constant 0 : i32
    %c0_i32_1 = arith.constant 0 : i32
    return %c0_i32, %c0_i32_0, %arg0 : i32, i32, i32
  }
  func.func @transform_4(%arg0: i32) -> (i32, i32) {
    %c0_i32 = arith.constant 0 : i32
    %c0_i32_0 = arith.constant 0 : i32
    %c0_i32_1 = arith.constant 0 : i32
    return %c0_i32, %c0_i32_0 : i32, i32
  }
}

</mosaic_0001>

<bundles_post_ra>
// kernel: tpu_custom_call.1
= control target key start
LH: loop header
LB: loop body
LE: loop exit
PB: predicated region body
PF: predicated region fallthrough
CT: control target
= control target key end

     0   :  { %s1107_s0 = inlined_call_operand.hbm [shape: f32[4,384], index: 0, kind: input, shape index: {}]   ;;  %s1108_s1 = inlined_call_operand.hbm [shape: s32[1,384], index: 1, kind: input, shape index: {}]   ;;  %s1109_s2 = inlined_call_operand.hbm [shape: f32[3,16,384], index: 2, kind: input, shape index: {}]   ;;  %s1110_s3 = inlined_call_operand.hbm [shape: f32[3,1,384], index: 3, kind: input, shape index: {}]   ;;  %s1111_s4 = inlined_call_operand.hbm [shape: f32[1,1], index: 4, kind: output, shape index: {}]  }
   0x1   :  { %1115 = sst [smem:[#allocation16_spill]] %s1107_s0 }
   0x2   :  { %9 = vsyncpa [#allocation4], 0 }
   0x3   :  { %11 = vsyncpa [#allocation4 + $0x1], 0 }
   0x4   :  { %12 = vsyncpa [#allocation7], 0 }
   0x5   :  { %14 = vsyncpa [#allocation7 + $0x1], 0 }
   0x6   :  { %15 = vsyncpa [#allocation10], 0 }
   0x7   :  { %17 = vsyncpa [#allocation10 + $0x1], 0 }
   0x8   :  { %18 = vsyncpa [#allocation5], 0  ;;  %s884_s15 = smov 0   ;;  %s886_s16 = smov 0  }
   0x9   :  { %s888_s17 = smov 0   ;;  %s890_s18 = smov 0  }
   0xa LB: > { %s903_s19 = sadd.s32 4294967295, %s843_s18   ;;  %s906_s20 = sadd.s32 1, %s843_s18   ;;  %s843_s18 = sphi %s890_s18, %s1128_s18   ;;  %s839_s17 = sphi %s888_s17, %s1127_s17   ;;  %s835_s16 = sphi %s886_s16, %s1126_s16   ;;  %s831_s15 = sphi %s884_s15, %s1125_s15  }
   0xb   : > { %s28_s21 = ssub.s32 %s843_s18, %s906_s20  ;;  %s31_s22 = sadd.s32 1, %s839_s17 }
   0xc   : > { %p29_p0 = scmp.eq.s32.totalorder %s28_s21, 0  ;;  %p38_p1 = scmp.ne.s32.totalorder %s839_s17, %s835_s16 }
   0xd   : > { %p39_p2 = scmp.eq.s32.totalorder %s843_s18, 0  ;;  %p44_p3 = scmp.ne.s32.totalorder %s835_s16, %s831_s15 }
   0xe   : > { %s916_s23 = scalar_select %p29_p0, %s839_s17, %s31_s22  }
   0xf   : > { %p40_p4 = por %p39_p2, %p38_p1  ;;  %p1112_p5 = scmp.eq.s32.totalorder %s903_s19, 0 }
  0x10   : > { %p617_p6 = scmp.lt.s32.totalorder %s843_s18, 3  ;;  %s927_s25 = sand.u32 1, %s839_s17  }
  0x11   : > { %p922_p7 = por %p1112_p5, %p44_p3  ;;  %s185_s27 = sand.u32 1, %s843_s18  }
  0x12   : > { %p929_p8 = pnand %p617_p6, %p40_p4  ;;  %s1114_s28 = sshll.u32 %s843_s18, 4 }
  0x13   : > { %s1116_s24 = scalar_select %p922_p7, 1, 0 }
  0x14   : > { %s940_s5 = scalar_lea.hbm %s1108_s1, %s1114_s28  ;;  %s188_s6 = scalar_lea.vmem [#allocation6], %s927_s25 }
  0x15   : > { %s195_s7 = sshll.u32 %s188_s6, 4  ;;  %s943_s8 = scalar_lea.sflag [#allocation7], %s185_s27  ;;  %s196_s7 = int_to_ptr.vmem [resolvable:$true] %s195_s7 }
  0x16   : > { %s675_s9 = scalar_lea.hbm %s940_s5, 16  ;;  %p949_p10 = pneg %p929_p8 }
  0x17   : > { %p676_p9 = scmp.ne.s32.totalorder %s940_s5, %s675_s9  ;;  %s680_s13 = scalar_lea.hbm %s1108_s1, 48 }
  0x18   : > { %p681_p13 = scmp.lt.s32.totalorder %s940_s5, %s1108_s1  ;;  %p682_p0 = scmp.lt.s32.totalorder %s680_s13, %s675_s9 }
  0x19   : > { %p678_p11 = pnand %p949_p10, %p676_p9 }
  0x1a   : > { %p683_p1 = por %p682_p0, %p681_p13 }
  0x1b   : > { %p679_p12 = pneg %p678_p11 }
  0x1d   : > { %p684_p2 = pnand %p683_p1, %p679_p12 }
  0x1f   : > { %687 = shalt.err (!%p684_p2)
}
  0x20   : > { %s688_s21 = scalar_lea.vmem %s196_s7, 16  ;;  %s845_s22 = smov [#allocation6]  }
  0x21   : > { %p689_p3 = scmp.ne.s32.totalorder %s196_s7, %s688_s21  ;;  %s693_s27 = sshll.u32 %s845_s22, 4  ;;  %s694_s27 = int_to_ptr.vmem [resolvable:$false] %s693_s27 }
  0x22   : > { %s695_s29 = scalar_lea.vmem %s694_s27, 32  ;;  %p696_p9 = scmp.lt.s32.totalorder %s196_s7, %s694_s27 }
  0x23   : > { %p691_p4 = pnand %p689_p3, %p949_p10  ;;  %p697_p11 = scmp.lt.s32.totalorder %s695_s29, %s688_s21 }
  0x25   : > { %p692_p6 = pneg %p691_p4  ;;  %p698_p5 = por %p697_p11, %p696_p9 }
  0x27   : > { %p699_p7 = pnand %p698_p5, %p692_p6 }
  0x29   : > { %702 = shalt.err (!%p699_p7)
}
  0x2a   : > { %610 = dma.hbm_to_vmem [thread:$0]  (!%p929_p8), %s940_s5, 16, %s196_s7, %s943_s8  }
  0x2b   : > { %p577_p12 = scmp.ge.s32.totalorder %s843_s18, 1  ;;  %p240_p13 = scmp.lt.s32.totalorder %s843_s18, 4 }
  0x2c   : > { %s572_s30 = sshll.u32 %s927_s25, 2  ;;  %s573_s9 = sshll.u32 %s843_s18, 6 }
  0x2d   : > { %p971_p0 = pnand %p577_p12, %p240_p13  ;;  %s171_s11 = scalar_lea.vmem [#allocation3], %s572_s30 }
  0x2e   : > { %s178_s12 = sshll.u32 %s171_s11, 4  ;;  %s1120_s0 = sld [smem:[#allocation16_spill]]  ;;  %s179_s12 = int_to_ptr.vmem [resolvable:$true] %s178_s12 }
  0x2f   : > { %s1119_s6 = scalar_select %p971_p0, 1, 0 }
  0x30   : > { %s168_s21 = scalar_lea.sflag [#allocation4], %s927_s25 }
  0x34   : > { %s176_s15 = scalar_lea.hbm %s1120_s0, %s573_s9  ;;  %s708_s27 = scalar_lea.hbm %s1120_s0, 192 }
  0x35   : > { %s703_s22 = scalar_lea.hbm %s176_s15, 64  ;;  %p709_p2 = scmp.lt.s32.totalorder %s176_s15, %s1120_s0 }
  0x36   : > { %p704_p5 = scmp.ne.s32.totalorder %s176_s15, %s703_s22  ;;  %p710_p3 = scmp.lt.s32.totalorder %s708_s27, %s703_s22 }
  0x38   : > { %p706_p7 = pnand %p704_p5, %p949_p10  ;;  %p711_p4 = por %p710_p3, %p709_p2 }
  0x3a   : > { %p707_p1 = pneg %p706_p7 }
  0x3c   : > { %p712_p6 = pnand %p711_p4, %p707_p1 }
  0x3e   : > { %715 = shalt.err (!%p712_p6)
}
  0x3f   : > { %s716_s30 = scalar_lea.vmem %s179_s12, 64  ;;  %s846_s9 = smov [#allocation3]  }
  0x40   : > { %p717_p9 = scmp.ne.s32.totalorder %s179_s12, %s716_s30  ;;  %s721_s11 = sshll.u32 %s846_s9, 4  ;;  %s722_s11 = int_to_ptr.vmem [resolvable:$false] %s721_s11 }
  0x41   : > { %s723_s13 = scalar_lea.vmem %s722_s11, 128  ;;  %p724_p13 = scmp.lt.s32.totalorder %s179_s12, %s722_s11 }
  0x42   : > { %p719_p11 = pnand %p717_p9, %p949_p10  ;;  %p725_p5 = scmp.lt.s32.totalorder %s723_s13, %s716_s30 }
  0x44   : > { %p720_p12 = pneg %p719_p11  ;;  %p726_p7 = por %p725_p5, %p724_p13 }
  0x46   : > { %p727_p0 = pnand %p726_p7, %p720_p12 }
  0x48   : > { %730 = shalt.err (!%p727_p0)
}
  0x49   : > { %607 = dma.hbm_to_vmem [thread:$0]  (!%p929_p8), %s176_s15, 64, %s179_s12, %s168_s21  }
  0x4a   : > { %s584_s28 = smul.u32 48, %s927_s25  ;;  %s575_s14 = sshll.u32 %s843_s18, 7 }
  0x4b   : > { %s997_s7 = scalar_lea.hbm %s1109_s2, %s575_s14  ;;  %s1121_s30 = sshll.u32 %s843_s18, 4 }
  0x4c   : > { %s206_s27 = scalar_lea.vmem [#allocation8], %s584_s28  ;;  %s1004_s13 = scalar_lea.hbm %s1110_s3, %s1121_s30 }
  0x4d   : > { %s212_s29 = sshll.u32 %s206_s27, 4  ;;  %s731_s12 = scalar_lea.hbm %s997_s7, 768  ;;  %s1006_s29 = int_to_ptr.vmem [resolvable:$true] %s212_s29 }
  0x4e   : > { %p732_p0 = scmp.ne.s32.totalorder %s997_s7, %s731_s12  ;;  %s736_s14 = scalar_lea.hbm %s1109_s2, 2304 }
  0x4f   : > { %p737_p3 = scmp.lt.s32.totalorder %s997_s7, %s1109_s2  ;;  %p738_p4 = scmp.lt.s32.totalorder %s736_s14, %s731_s12 }
  0x50   : > { %p734_p1 = pnand %p732_p0, %p949_p10 }
  0x51   : > { %p739_p6 = por %p738_p4, %p737_p3 }
  0x52   : > { %p735_p2 = pneg %p734_p1 }
  0x54   : > { %p740_p9 = pnand %p739_p6, %p735_p2 }
  0x56   : > { %743 = shalt.err (!%p740_p9)
}
  0x57   : > { %s744_s18 = scalar_lea.vmem %s1006_s29, 768  ;;  %s847_s5 = smov [#allocation8]  }
  0x58   : > { %p745_p11 = scmp.ne.s32.totalorder %s1006_s29, %s744_s18  ;;  %s749_s27 = sshll.u32 %s847_s5, 4  ;;  %s750_s27 = int_to_ptr.vmem [resolvable:$false] %s749_s27 }
  0x59   : > { %s751_s30 = scalar_lea.vmem %s750_s27, 1536  ;;  %p752_p5 = scmp.lt.s32.totalorder %s1006_s29, %s750_s27 }
  0x5a   : > { %p747_p12 = pnand %p745_p11, %p949_p10  ;;  %p753_p7 = scmp.lt.s32.totalorder %s751_s30, %s744_s18 }
  0x5c   : > { %p748_p13 = pneg %p747_p12  ;;  %p754_p0 = por %p753_p7, %p752_p5 }
  0x5e   : > { %p755_p1 = pnand %p754_p0, %p748_p13 }
  0x60   : > { %758 = shalt.err (!%p755_p1)
}
  0x61   : > { %s848_s9 = smov 384   ;;  %s849_s11 = smov 128  }
  0x62   : > { %s850_s12 = smov 8   ;;  %s585_s15 = smul.u32 3, %s927_s25 }
  0x63   : > { %613 = dma.hbm_to_vmem [thread:$0]  (!%p929_p8), %s997_s7, 768, %s1006_s29, %s943_s8, %s848_s9, %s849_s11, %s850_s12  }
  0x64   : > { %s226_s21 = scalar_lea.vmem [#allocation9], %s585_s15  ;;  %s223_s22 = scalar_lea.sflag [#allocation10], %s927_s25 }
  0x65   : > { %s232_s14 = sshll.u32 %s226_s21, 4  ;;  %s759_s28 = scalar_lea.hbm %s1004_s13, 48  ;;  %s1030_s14 = int_to_ptr.vmem [resolvable:$true] %s232_s14 }
  0x66   : > { %p760_p2 = scmp.ne.s32.totalorder %s1004_s13, %s759_s28  ;;  %s764_s27 = scalar_lea.hbm %s1110_s3, 144 }
  0x67   : > { %p765_p6 = scmp.lt.s32.totalorder %s1004_s13, %s1110_s3  ;;  %p766_p9 = scmp.lt.s32.totalorder %s764_s27, %s759_s28 }
  0x68   : > { %p762_p3 = pnand %p760_p2, %p949_p10 }
  0x69   : > { %p767_p11 = por %p766_p9, %p765_p6 }
  0x6a   : > { %p763_p4 = pneg %p762_p3 }
  0x6c   : > { %p768_p12 = pnand %p767_p11, %p763_p4 }
  0x6e   : > { %771 = shalt.err (!%p768_p12)
}
  0x6f   : > { %s772_s8 = scalar_lea.vmem %s1030_s14, 48  ;;  %s851_s7 = smov [#allocation9]  }
  0x70   : > { %p773_p13 = scmp.ne.s32.totalorder %s1030_s14, %s772_s8  ;;  %s777_s29 = sshll.u32 %s851_s7, 4  ;;  %s778_s29 = int_to_ptr.vmem [resolvable:$false] %s777_s29 }
  0x71   : > { %s779_s9 = scalar_lea.vmem %s778_s29, 96  ;;  %p780_p0 = scmp.lt.s32.totalorder %s1030_s14, %s778_s29 }
  0x72   : > { %p775_p5 = pnand %p773_p13, %p949_p10  ;;  %p781_p1 = scmp.lt.s32.totalorder %s779_s9, %s772_s8 }
  0x74   : > { %p776_p7 = pneg %p775_p5  ;;  %p782_p2 = por %p781_p1, %p780_p0 }
  0x76   : > { %p783_p3 = pnand %p782_p2, %p776_p7 }
  0x78   : > { %786 = shalt.err (!%p783_p3)
}
  0x79   : > { %s852_s0 = smov 48   ;;  %s853_s11 = smov 16  }
  0x7a   : > { %s854_s12 = smov 1   ;;  %p1122_p10 = scmp.ne.s32.totalorder %s1119_s6, 0 }
  0x7b   : > { %616 = dma.hbm_to_vmem [thread:$0]  (!%p929_p8), %s1004_s13, 48, %s1030_s14, %s223_s22, %s852_s0, %s853_s11, %s854_s12  }
  0x7c   : > { %244 = sbr.rel (%p1122_p10) target bundleno = 395 (0x18b), region = 36  ;;  %s1058_s10 = sand.u32 (!%p1122_p10), 1, %s835_s16  }
  0x7d   : > { %s578_s15 = sshll.u32 (!%p1122_p10), %s1058_s10, 2  ;;  %s247_s21 = scalar_lea.sflag (!%p1122_p10), [#allocation4], %s1058_s10 }
  0x7e   : > { %s250_s28 = scalar_lea.vmem (!%p1122_p10), [#allocation3], %s578_s15  ;;  %p1123_p4 = scmp.ne.s32.totalorder (!%p1122_p10), %s1116_s24, 0 }
  0x81   : > { %814 = dma.done.wait (%p1123_p4), %s247_s21, 64  }
  0x82   : > { %816 = vsyncadd (%p1123_p4), %s247_s21, 4294967232  ;;  %s255_s25 = sand.u32 1, %s903_s19   ;;  %s258_s6 = scalar_lea.vmem [#allocation6], %s1058_s10 }
  0x83   : > { %s256_s26 = scalar_lea.sflag [#allocation7], %s255_s25 }
  0x84   : > { %818 = dma.done.wait (%p1123_p4), %s256_s26, 784  }
  0x85   : > { %820 = vsyncadd (%p1123_p4), %s256_s26, 4294966512  ;;  %s586_s13 = smul.u32 48, %s1058_s10  ;;  %s273_s18 = scalar_lea.sflag [#allocation10], %s1058_s10 }
  0x86   : > { %s587_s14 = smul.u32 3, %s1058_s10 }
  0x87   : > { %s267_s22 = scalar_lea.vmem [#allocation8], %s586_s13 }
  0x88   : > { %s1075_s5 = scalar_lea.vmem [#allocation9], %s587_s14 }
  0x89   : > { %822 = dma.done.wait (%p1123_p4), %s273_s18, 48  }
  0x8a   : > { %824 = vsyncadd (%p1123_p4), %s273_s18, 4294967248  ;;  %vm317_vm0 = vcmask 1043456   ;;  %v316_v0 = vld [vmem:[%s250_s28] sm:$0xf]  ;;  %v342_v1 = vld [vmem:[%s267_s22] sm:$0xff]  ;;  %v325_v11 = vlaneseq  ;;  %v856_v56 = vmov 0.5  }
  0x8b   : > { %v318_v2 = vsel %vm317_vm0, %v316_v0, -inf  ;;  %v343_v3 = vld [vmem:[%s267_s22 + $0x8] sm:$0xff]  ;;  %v344_v4 = vld [vmem:[%s267_s22 + $0x10] sm:$0xff]  ;;  %v345_v5 = vld [vmem:[%s267_s22 + $0x18] sm:$0xff]  ;;  %663 = vlog2.f32 %v342_v1  ;;  %v855_v36 = vmov 1966171168  }
  0x8c   : > { %v319_v6 = vrot.slane %v318_v2, 4  ;;  %v346_v7 = vld [vmem:[%s267_s22 + $0x20] sm:$0xff]  ;;  %665 = vlog2.f32 %v343_v3  ;;  %v347_v8 = vld [vmem:[%s267_s22 + $0x28] sm:$0xff]  ;;  %v326_v14 = vshrl.u32 %v325_v11, 7  ;;  %v390_v37 = vunpack.c.l.s4 %v855_v36  ;;  %s857_s24 = smov 0.0   ;;  %p1124_p8 = scmp.eq.s32.totalorder %s903_s19, 0 }
  0x8d   : > { %667 = vlog2.f32 %v344_v4  ;;  %v339_v47 = vld [vmem:[%s258_s6] sm:$0x1]  ;;  %vm426_vm6 = vcmask 1041409   ;;  %vm429_vm7 = vcmask 1042434   ;;  %vm432_vm8 = vcmask 1042432   ;;  %p619_p6 = scmp.eq.s32.totalorder %s903_s19, 2 }
  0x8e   : > { %v320_v9 = vmax.f32 %v318_v2, %v319_v6  ;;  %669 = vlog2.f32 %v345_v5  ;;  %v391_v46 = vunpack.c.0.s8 %v390_v37  ;;  %v386_v50 = vsub.s32 0, %v326_v14  ;;  %v382_v5 = vld [vmem:[%s1075_s5 + $0x1] sm:$0x1]  ;;  %v383_v6 = vld [vmem:[%s1075_s5 + $0x2] sm:$0x1]  ;;  %599 = sst [smem:[#allocation2]] (%p1124_p8), %s857_s24 }
  0x8f   : > { %671 = vlog2.f32 %v346_v7  ;;  %s418_s27 = sld [smem:[#allocation2]]  ;;  %s858_s29 = smov [#allocation11]  }
  0x90   : > { %v321_v10 = vrot.slane %v320_v9, 2  ;;  %673 = vlog2.f32 %v347_v8  ;;  %v394_v55 = vsub.s32 %v391_v46, %v326_v14 }
  0x92   : > { %v322_v12 = vmax.f32 %v320_v9, %v321_v10 }
  0x94   : > { %v323_v13 = vrot.slane %v322_v12, 1 }
  0x96   : > { %v324_v15 = vmax.f32 %v322_v12, %v323_v13 }
  0x98   : > { %v664_v16 = vpop.eup %663  ;;  %vm327_vm1 = vcmp.eq.f32.partialorder %v316_v0, %v324_v15  ;;  %v381_v0 = vld [vmem:[%s1075_s5] sm:$0x1] }
  0x99   : > { %v666_v17 = vpop.eup %665  ;;  %v328_v18 = vsel %vm327_vm1, %v326_v14, 4  ;;  %v349_v19 = vmul.f32 0.6931472, %v664_v16 }
  0x9a   : > { %v668_v20 = vpop.eup %667  ;;  %v329_v21 = vsel %vm317_vm0, %v328_v18, 2147483647  ;;  %v351_v22 = vmul.f32 0.6931472, %v666_v17 }
  0x9b   : > { %v670_v23 = vpop.eup %669  ;;  %v330_v24 = vrot.slane %v329_v21, 4  ;;  %v353_v25 = vmul.f32 0.6931472, %v668_v20 }
  0x9c   : > { %v672_v26 = vpop.eup %671  ;;  %v355_v27 = vmul.f32 0.6931472, %v670_v23  ;;  %v360_v28 = vadd.f32 %v351_v22, %v349_v19 }
  0x9d   : > { %v674_v29 = vpop.eup %673  ;;  %vm331_vm2 = vcmp.lt.s32.totalorder %v329_v21, %v330_v24  ;;  %v357_v30 = vmul.f32 0.6931472, %v672_v26 }
  0x9e   : > { %v332_v31 = vsel %vm331_vm2, %v329_v21, %v330_v24  ;;  %v359_v32 = vmul.f32 0.6931472, %v674_v29  ;;  %v361_v33 = vrot.slane %v360_v28, 4  ;;  %v367_v34 = vadd.f32 %v355_v27, %v353_v25 }
  0x9f   : > { %v333_v35 = vrot.slane %v332_v31, 2 }
  0xa0   : > { %v362_v38 = vadd.f32 %v361_v33, %v360_v28  ;;  %v368_v39 = vrot.slane %v367_v34, 4  ;;  %v374_v40 = vadd.f32 %v359_v32, %v357_v30 }
  0xa1   : > { %vm334_vm3 = vcmp.lt.s32.totalorder %v332_v31, %v333_v35 }
  0xa2   : > { %v335_v41 = vsel %vm334_vm3, %v332_v31, %v333_v35  ;;  %v363_v42 = vrot.slane %v362_v38, 2  ;;  %v369_v43 = vadd.f32 %v368_v39, %v367_v34  ;;  %v375_v44 = vrot.slane %v374_v40, 4 }
  0xa3   : > { %v336_v45 = vrot.slane %v335_v41, 1 }
  0xa4   : > { %v370_v48 = vrot.slane %v369_v43, 2  ;;  %v376_v49 = vadd.f32 %v375_v44, %v374_v40  ;;  %v364_v52 = vadd.f32 %v363_v42, %v362_v38 }
  0xa5   : > { %vm337_vm4 = vcmp.lt.s32.totalorder %v335_v41, %v336_v45 }
  0xa6   : > { %v338_v51 = vsel %vm337_vm4, %v335_v41, %v336_v45  ;;  %v371_v53 = vadd.f32 %v370_v48, %v369_v43  ;;  %v377_v54 = vrot.slane %v376_v49, 2  ;;  %v365_v60 = vrot.slane %v364_v52, 1 }
  0xa7   : > { %vm340_vm5 = vcmp.eq.s32.totalorder %v338_v51, %v339_v47 }
  0xa8   : > { %v341_v57 = vsel %vm340_vm5, 1.0, %v856_v56  ;;  %v378_v58 = vadd.f32 %v377_v54, %v376_v49  ;;  %v372_v61 = vrot.slane %v371_v53, 1  ;;  %v366_v3 = vadd.f32 %v365_v60, %v364_v52 }
  0xa9   : > { %v387_v59 = vrot.slane %v341_v57, %v386_v50 }
  0xaa   : > { %v379_v62 = vrot.slane %v378_v58, 1  ;;  %v373_v4 = vadd.f32 %v372_v61, %v371_v53 }
  0xab   : > { %v395_v63 = vrot.slane %v387_v59, %v394_v55 }
  0xac   : > { %v380_v7 = vadd.f32 %v379_v62, %v378_v58 }
  0xad   : > { %v396_v1 = vcombine.high %v395_v63, %v395_v63  ;;  %v403_v2 = vrot.slane %v395_v63, %v394_v55 }
  0xaf   : > { %v410_v8 = vrot.slane %v396_v1, %v394_v55  ;;  %v411_v9 = vcombine.high %v403_v2, %v403_v2  ;;  %v415_v10 = vmul.f32 %v403_v2, %v381_v0 }
  0xb1   : > { %v416_v11 = vmul.f32 %v410_v8, %v382_v5  ;;  %v417_v12 = vmul.f32 %v411_v9, %v383_v6  ;;  %v419_v13 = vmul.f32 %v415_v10, %v366_v3 }
  0xb3   : > { %v420_v14 = vmul.f32 %v416_v11, %v373_v4  ;;  %v421_v15 = vmul.f32 %v417_v12, %v380_v7 }
  0xb5   : > { %v425_v16 = vrot.slane %v420_v14, 7  ;;  %v428_v17 = vrot.slane %v421_v15, 6 }
  0xb7   : > { %v427_v18 = vsel %vm426_vm6, %v425_v16, %v419_v13 }
  0xb8   : > { %v430_v19 = vsel %vm429_vm7, %v428_v17, %v427_v18 }
  0xb9   : > { %v433_v20 = vsel %vm432_vm8, %v430_v19, 0.0 }
  0xba   : > { %434 = vadd.xlane.f32.xlu0 %v433_v20 }
 0x143   : > { %v435_v21 = vpop.xlane.xlu0 %434 }
 0x144   : > { %v436_v22 = vrot.slane %v435_v21, 4 }
 0x146   : > { %v437_v23 = vadd.f32 %v436_v22, %v435_v21 }
 0x148   : > { %v438_v24 = vrot.slane %v437_v23, 2 }
 0x14a   : > { %v439_v25 = vadd.f32 %v438_v24, %v437_v23 }
 0x14c   : > { %v440_v26 = vrot.slane %v439_v25, 1 }
 0x14e   : > { %v441_v27 = vadd.f32 %v440_v26, %v439_v25 }
 0x150   : > { %588 = vpush %v441_v27 }
 0x181   : > { %s589_s30 = spop %588 }
 0x182   : > { %s443_s8 = sadd.f32 %s589_s30, %s418_s27 }
 0x184   : > { %445 = sst [smem:[#allocation2]] %s443_s8  ;;  %s447_s7 = smul.f32 0.0033333334, %s443_s8 }
 0x186   : > { %449 = sst [smem:[#allocation11]] %s447_s7 }
 0x187   : > { %601 = dma.smem_to_hbm (%p619_p6), %s858_s29, 16, %s1111_s4, [#allocation5]  }
 0x188   : > { %826 = dma.done.wait (%p619_p6), [#allocation5], 16  }
 0x189   : > { %828 = vsyncadd (%p619_p6), [#allocation5], 4294967280 }
 0x18a   : > { %463 = sfence }
 0x18b PF: > { %p21_p9 = scmp.ge.s32.totalorder %s906_s20, 5   ;;  %s1125_s15 = smov %s835_s16 }
 0x18c   : > { %s1126_s16 = smov %s839_s17  ;;  %s1127_s17 = smov %s916_s23 }
 0x18d   : > { %s1128_s18 = smov %s906_s20  ;;  %23 = sbr.rel (!%p21_p9) target bundleno = 10 (0xa), region = 117 }
 0x192   :  { %469 = vsyncpa [#allocation4], 1 }
 0x193   :  { %471 = vsyncpa [#allocation4 + $0x1], 1 }
 0x194   :  { %472 = vsyncpa [#allocation7], 1 }
 0x195   :  { %474 = vsyncpa [#allocation7 + $0x1], 1 }
 0x196   :  { %475 = vsyncpa [#allocation10], 1 }
 0x197   :  { %477 = vsyncpa [#allocation10 + $0x1], 1 }
 0x198   :  { %478 = vsyncpa [#allocation5], 1 }
 0x199   :  { %480 = vsyncpa [#allocation5 + $0x1], 1 }

</bundles_post_ra>
